<compile_context>
chip_gen: v7x
topology: tpu7x:2x2x1
jax: 0.10.0
libtpu: 0.0.40
codegen_flags: <defaults>
</compile_context>

<pallas_src>
import functools

import jax
import jax.numpy as jnp
from jax.experimental import pallas as pl
from jax.experimental.pallas import tpu as pltpu

IN_FEATURES = 10
OUT_FEATURES = 10

# Batch tile used once B is large enough that tiling pays off. Multiple of 8
# (sublane alignment); a [1024, 10] f32 tile is ~40 KiB so double-buffering
# fits trivially in VMEM on v5e/v6e/v7x.
_DEFAULT_BATCH_TILE = 1024


def mycell_kernel(x_ref, w_ref, b_ref, o_ref):
    # Hot path: matmul (MXU) + bias add (VPU) + tanh (EUP), all in VMEM, f32.
    y = jnp.dot(x_ref[...], w_ref[...], preferred_element_type=jnp.float32)
    o_ref[...] = jnp.tanh(y + b_ref[...]).astype(o_ref.dtype)


def _cost_estimate(batch):
    return pl.CostEstimate(
        flops=2 * batch * IN_FEATURES * OUT_FEATURES,
        transcendentals=batch * OUT_FEATURES,
        bytes_accessed=4 * (batch * IN_FEATURES
                            + IN_FEATURES * OUT_FEATURES
                            + OUT_FEATURES
                            + batch * OUT_FEATURES),
    )


def init_mycell_params(key, dtype=jnp.float32):
    """One-time parameter init mirroring torch.nn.Linear(10, 10).

    Returns the weight already transposed to [in, out] and the bias as
    [1, out], so the per-call hot path contains no transpose/reshape.
    """
    kw, kb = jax.random.split(key)
    bound = 1.0 / float(IN_FEATURES) ** 0.5
    weight = jax.random.uniform(kw, (OUT_FEATURES, IN_FEATURES),
                                minval=-bound, maxval=bound, dtype=dtype)
    bias = jax.random.uniform(kb, (OUT_FEATURES,),
                              minval=-bound, maxval=bound, dtype=dtype)
    return weight.T, bias.reshape(1, OUT_FEATURES)   # done once, at init


@functools.partial(jax.jit, static_argnames=("batch_tile",))
def mycell_forward(x, w_t, b2d, *, batch_tile=None):
    """x: [B, 10] f32; w_t: [10, 10] = weight.T (pre-transposed); b2d: [1, 10]."""
    B = x.shape[0]
    if batch_tile is None and B >= 2 * _DEFAULT_BATCH_TILE:
        batch_tile = _DEFAULT_BATCH_TILE

    if batch_tile is None:
        # Small batch: single block, no grid / index-map bookkeeping at all.
        vmem = pl.BlockSpec(memory_space=pltpu.MemorySpace.VMEM)
        return pl.pallas_call(
            mycell_kernel,
            out_shape=jax.ShapeDtypeStruct((B, OUT_FEATURES), jnp.float32),
            in_specs=[vmem, vmem, vmem],
            out_specs=vmem,
            cost_estimate=_cost_estimate(B),
        )(x, w_t, b2d)

    # Large batch: tile the batch axis ("parallel" -> shards across the two
    # TensorCores on v7x). Weight/bias blocks are index-invariant, so they
    # stay resident in VMEM across iterations. If B is not a multiple of the
    # tile, Pallas pads the boundary block on read and masks it on write;
    # each output row depends only on its own input row, so this is safe.
    tb = batch_tile
    assert tb % 8 == 0, "batch tile must be sublane-aligned (multiple of 8)"
    return pl.pallas_call(
        mycell_kernel,
        out_shape=jax.ShapeDtypeStruct((B, OUT_FEATURES), jnp.float32),
        grid=(pl.cdiv(B, tb),),
        in_specs=[
            pl.BlockSpec((tb, IN_FEATURES), lambda i: (i, 0)),
            pl.BlockSpec((IN_FEATURES, OUT_FEATURES), lambda i: (0, 0)),
            pl.BlockSpec((1, OUT_FEATURES), lambda i: (0, 0)),
        ],
        out_specs=pl.BlockSpec((tb, OUT_FEATURES), lambda i: (i, 0)),
        compiler_params=pltpu.CompilerParams(
            dimension_semantics=("parallel",)),
        cost_estimate=_cost_estimate(B),
    )(x, w_t, b2d)


if __name__ == "__main__":
    key = jax.random.PRNGKey(0)
    kp, kx_small, kx_big = jax.random.split(key, 3)

    # Module "init": weight is transposed / bias reshaped exactly once here.
    w_t, b2d = init_mycell_params(kp)

    # 1) Small batch -> gridless single-block path.
    batch = 8
    x = jax.random.normal(kx_small, (batch, IN_FEATURES), dtype=jnp.float32)
    out = jax.block_until_ready(mycell_forward(x, w_t, b2d))
    ref = jnp.tanh(x @ w_t + b2d)
    assert out.shape == (batch, OUT_FEATURES)
    assert jnp.allclose(out, ref, atol=1e-5, rtol=1e-5)

    # 2) Larger batch -> batch-tiled "parallel" grid path (small tile forced
    #    here just to exercise it; production uses the 1024-row default).
    big_batch = 256
    xb = jax.random.normal(kx_big, (big_batch, IN_FEATURES), dtype=jnp.float32)
    out_b = jax.block_until_ready(mycell_forward(xb, w_t, b2d, batch_tile=64))
    ref_b = jnp.tanh(xb @ w_t + b2d)
    assert out_b.shape == (big_batch, OUT_FEATURES)
    assert jnp.allclose(out_b, ref_b, atol=1e-5, rtol=1e-5)

    print("KERNEL_OK")
</pallas_src>

<mosaic_0001>
module attributes {stable_mosaic.version = 11 : i64} {
  func.func @mycell_kernel(%arg0: memref<8x10xf32, #tpu.memory_space<vmem>>, %arg1: memref<10x10xf32, #tpu.memory_space<vmem>>, %arg2: memref<1x10xf32, #tpu.memory_space<vmem>>, %arg3: memref<8x10xf32, #tpu.memory_space<vmem>>) attributes {dimension_semantics = [], scalar_prefetch = 0 : i64, scratch_operands = 0 : i64, tpu.core_type = #tpu.core_type<tc>} {
    %c0 = arith.constant 0 : index
    %c0_0 = arith.constant 0 : index
    %0 = vector.load %arg0[%c0, %c0_0] : memref<8x10xf32, #tpu.memory_space<vmem>>, vector<8x10xf32>
    %c0_1 = arith.constant 0 : index
    %c0_2 = arith.constant 0 : index
    %1 = vector.load %arg1[%c0_1, %c0_2] : memref<10x10xf32, #tpu.memory_space<vmem>>, vector<10x10xf32>
    %cst = arith.constant dense<0.000000e+00> : vector<8x10xf32>
    %2 = tpu.matmul %0, %1, %cst {dimension_numbers = #tpu.dot_dimension_numbers<[1], [0], [0], [1], [0, 0, 1, 1], [], []>} : vector<8x10xf32>, vector<10x10xf32>, vector<8x10xf32> -> vector<8x10xf32>
    %c0_3 = arith.constant 0 : index
    %c0_4 = arith.constant 0 : index
    %3 = vector.load %arg2[%c0_3, %c0_4] : memref<1x10xf32, #tpu.memory_space<vmem>>, vector<1x10xf32>
    %4 = vector.broadcast %3 : vector<1x10xf32> to vector<8x10xf32>
    %5 = arith.addf %2, %4 : vector<8x10xf32>
    %6 = math.tanh %5 : vector<8x10xf32>
    %c0_5 = arith.constant 0 : index
    %c0_6 = arith.constant 0 : index
    %7 = vector.load %arg3[%c0_5, %c0_6] : memref<8x10xf32, #tpu.memory_space<vmem>>, vector<8x10xf32>
    tpu.vector_store %arg3[%c0_5, %c0_6], %6 {strides = array<i32>} : memref<8x10xf32, #tpu.memory_space<vmem>>, vector<8x10xf32>,
    return
  }
}

</mosaic_0001>

<bundles_post_ra>
// kernel: mycell_forward.1
= control target key start
LH: loop header
LB: loop body
LE: loop exit
PB: predicated region body
PF: predicated region fallthrough
CT: control target
= control target key end

     0   :  { %8 = vsyncpa [#allocation3], 0  ;;  %s322_s0 = inlined_call_operand.hbm [shape: f32[8,10], index: 0, kind: input, shape index: {}]   ;;  %s323_s1 = inlined_call_operand.hbm [shape: f32[10,10], index: 1, kind: input, shape index: {}]   ;;  %s324_s2 = inlined_call_operand.vmem [shape: f32[1,10], index: 2, kind: input, shape index: {}]   ;;  %s325_s3 = inlined_call_operand.hbm [shape: f32[8,10], index: 3, kind: output, shape index: {}]  }
   0x1   :  { %9 = vsyncpa [#allocation6], 0 }
   0x2   :  { %10 = vsyncpa [#allocation4], 0  ;;  %s247_s12 = smov [#allocation2]   ;;  %s248_s14 = smov [#allocation5]  }
   0x3   :  { %s17_s13 = sshll.u32 %s247_s12, 4  ;;  %s26_s15 = sshll.u32 %s248_s14, 4  ;;  %s18_s13 = int_to_ptr.vmem [resolvable:$true] %s17_s13  ;;  %s276_s15 = int_to_ptr.vmem [resolvable:$true] %s26_s15 }
   0x4   :  { %s175_s18 = scalar_lea.hbm %s322_s0, 128 }
   0x5   :  { %p176_p0 = scmp.ne.s32.totalorder %s322_s0, %s175_s18  ;;  %p179_p1 = scmp.lt.u32.totalorder %s175_s18, %s322_s0 }
   0x7   :  { %p181_p2 = pnand %p179_p1, %p176_p0 }
   0x9   :  { %184 = shalt.err (!%p181_p2)
}
   0xa   :  { %s185_s23 = scalar_lea.vmem %s18_s13, 128  ;;  %p190_p4 = scmp.lt.s32.totalorder %s18_s13, %s18_s13 }
   0xb   :  { %p186_p3 = scmp.ne.s32.totalorder %s18_s13, %s185_s23  ;;  %p191_p5 = scmp.lt.s32.totalorder %s185_s23, %s185_s23 }
   0xd   :  { %p192_p6 = por %p191_p5, %p190_p4 }
   0xf   :  { %p193_p7 = pnand %p192_p6, %p186_p3 }
  0x11   :  { %196 = shalt.err (!%p193_p7)
}
  0x12   :  { %20 = dma.hbm_to_vmem [thread:$0]  %s322_s0, 128, %s18_s13, [#allocation3]  }
  0x13   :  { %s197_s28 = scalar_lea.hbm %s323_s1, 256 }
  0x14   :  { %p198_p8 = scmp.ne.s32.totalorder %s323_s1, %s197_s28  ;;  %p201_p9 = scmp.lt.u32.totalorder %s197_s28, %s323_s1 }
  0x16   :  { %p203_p10 = pnand %p201_p9, %p198_p8 }
  0x18   :  { %206 = shalt.err (!%p203_p10)
}
  0x19   :  { %s207_s6 = scalar_lea.vmem %s276_s15, 256  ;;  %p212_p12 = scmp.lt.s32.totalorder %s276_s15, %s276_s15 }
  0x1a   :  { %p208_p11 = scmp.ne.s32.totalorder %s276_s15, %s207_s6  ;;  %p213_p13 = scmp.lt.s32.totalorder %s207_s6, %s207_s6 }
  0x1c   :  { %p214_p0 = por %p213_p13, %p212_p12 }
  0x1e   :  { %p215_p1 = pnand %p214_p0, %p208_p11 }
  0x20   :  { %218 = shalt.err (!%p215_p1)
}
  0x21   :  { %s249_s0 = smov 128   ;;  %s250_s7 = smov 8  }
  0x22   :  { %32 = dma.hbm_to_vmem [thread:$0]  %s323_s1, 256, %s276_s15, [#allocation6], %s249_s0, %s249_s0, %s250_s7  }
  0x23   :  { %241 = dma.done.wait [#allocation3], 128  }
  0x24   :  { %242 = vsyncadd [#allocation3], 4294967168 }
  0x25   :  { %243 = dma.done.wait [#allocation6], 256  }
  0x26   :  { %244 = vsyncadd [#allocation6], 4294967040  ;;  %v251_v0 = vmov 0.0|0.0   ;;  %vm252_vm0 = vmmov 0   ;;  %v253_v1 = vmov 0.0   ;;  %vm55_vm1 = vcmask 1041408  }
  0x27   :  { %160 = vmatprep.subr.bf16.mxu0 %v251_v0  ;;  %157 = vmatprep.mubr.msk.f32.mxu0 %vm252_vm0, %v253_v1  ;;  %v42_v2 = vld [vmem:[#allocation5] sm:$0xff]  ;;  %v43_v3 = vld [vmem:[#allocation5 + $0x8] sm:$0x3]  ;;  %vm254_vm2 = vmmov 1   ;;  %v41_v5 = vld [vmem:[#allocation2] sm:$0xff]  ;;  %vm51_vm4 = vcmask 80896  }
  0x28   :  { %vm162_vm3 = vmpackc.low %vm55_vm1, %vm254_vm2  ;;  %v161_v4 = vpack.c.bf16 %v43_v3, %v42_v2  ;;  %v147_v6 = vld [vmem:[%s324_s2] ss:$0 sm:$0xff]  ;;  %s255_s11 = smov [#allocation7]  }
  0x29   :  { %s137_s12 = sshll.u32 %s255_s11, 4  ;;  %s138_s12 = int_to_ptr.vmem [resolvable:$true] %s137_s12 }
  0x2a   :  { %163 = vmatpush3.bf16.msk.msra.mxu0 %vm162_vm3, %v161_v4  ;;  %s219_s13 = scalar_lea.vmem %s138_s12, 128  ;;  %p224_p3 = scmp.lt.s32.totalorder %s138_s12, %s138_s12 }
  0x2b   :  { %p220_p2 = scmp.ne.s32.totalorder %s138_s12, %s219_s13  ;;  %p225_p4 = scmp.lt.s32.totalorder %s219_s13, %s219_s13 }
  0x2d   :  { %158 = vmatmul.mubr.msk.f32.vlgmr.msra.gmra.mrb[0].mxu0 %vm51_vm4, %v41_v5  ;;  %p226_p5 = por %p225_p4, %p224_p3 }
  0x2f   :  { %p227_p6 = pnand %p226_p5, %p220_p2 }
 0x100   :  { %v125_v7 = vpop.f32.mrb[0].mxu0 }
 0x101   :  { %v126_v8 = vadd.f32 %v147_v6, %v125_v7  ;;  %v159_v9 = vpop.f32.mrb[1].mxu0 }
 0x103   :  { %173 = vtanh.f32 %v126_v8 }
 0x10d   :  { %v174_v10 = vpop.eup %173 }
 0x10e   :  { %130 = vst.msk [vmem:[#allocation7] sm:$0xff] %vm51_vm4, %v174_v10 }
 0x10f   :  { %230 = shalt.err (!%p227_p6)
}
 0x110   :  { %s231_s2 = scalar_lea.hbm %s325_s3, 128 }
 0x111   :  { %p232_p7 = scmp.ne.s32.totalorder %s325_s3, %s231_s2  ;;  %p235_p8 = scmp.lt.u32.totalorder %s231_s2, %s325_s3 }
 0x113   :  { %p237_p9 = pnand %p235_p8, %p232_p7 }
 0x115   :  { %240 = shalt.err (!%p237_p9)
}
 0x116   :  { %140 = dma.vmem_to_hbm [thread:$0]  %s138_s12, 128, %s325_s3, [#allocation4]  }
 0x117   :  { %245 = dma.done.wait [#allocation4], 128  }
 0x118   :  { %246 = vsyncadd [#allocation4], 4294967168 }
 0x119   :  { %144 = vsyncpa [#allocation3], 1 }
 0x11a   :  { %145 = vsyncpa [#allocation6], 1 }
 0x11b   :  { %146 = vsyncpa [#allocation4], 1 }

</bundles_post_ra>
